<compile_context>
chip_gen: v5e
topology: v5e:2x2
jax: 0.10.0
libtpu: 0.0.40
codegen_flags: <defaults>
</compile_context>

<pallas_src>
import functools

import jax
import jax.numpy as jnp
from jax.experimental import pallas as pl
from jax.experimental.pallas import tpu as pltpu


def _nll_loss_kernel(pred_ref, tgt_ref, out_ref, *, c, rows_total,
                     tiles_per_slice):
    s = pl.program_id(0)                      # 'parallel' slice (v7x TC split)
    i = pl.program_id(1)                      # 'arbitrary' row-tile loop
    tile_idx = s * tiles_per_slice + i        # unclamped global row-tile index

    @pl.when(i == 0)
    def _init():                              # fresh accumulator per slice
        out_ref[...] = jnp.zeros_like(out_ref)

    pred = pred_ref[...]                      # (tr, cp) native dtype
    tgt = tgt_ref[...]                        # (tr, g)  int32
    tr, cp = pred.shape
    g = tgt.shape[1]

    # sample q of a packed row owns lanes [q*c, (q+1)*c); its target sits at
    # lane q*c + target.  Matches across q are disjoint -> OR of g compares.
    lanes = jax.lax.broadcasted_iota(jnp.int32, (tr, cp), 1)
    mask = lanes == tgt[:, 0:1]
    for q in range(1, g):
        mask = mask | (lanes == tgt[:, q:q + 1] + q * c)

    def _accumulate(m):
        # select in native dtype, upcast only after the select, accumulate f32
        picked = jnp.where(m, pred, jnp.zeros_like(pred)).astype(jnp.float32)
        out_ref[...] += jnp.sum(picked)

    row_start = tile_idx * tr
    is_full = row_start + tr <= rows_total

    @pl.when(is_full)
    def _steady():                            # steady state: no row mask
        _accumulate(mask)

    @pl.when(jnp.logical_not(is_full))
    def _ragged():                            # last real tile / phantom tiles
        subl = jax.lax.broadcasted_iota(jnp.int32, (tr, 1), 0)
        valid = (subl + row_start) < rows_total
        _accumulate(mask & valid)


def nll_loss_pallas(pred, target, trans_feat=None, *, tile_rows=None):
    """Pallas equivalent of get_loss.forward(pred, target, trans_feat)."""
    del trans_feat                            # unused by the loss (same as PyTorch)
    n, c = pred.shape
    itemsize = jnp.dtype(pred.dtype).itemsize

    # ---- lane packing: g consecutive samples per packed row (g | N, g*C<=128)
    g_cap = max(1, min(8, 128 // c))          # cap unroll of the compare loop
    g = 1
    for cand in range(min(g_cap, n), 0, -1):
        if n % cand == 0:
            g = cand
            break
    rows = n // g
    cp = g * c

    pred_packed = pred.reshape(rows, cp)                      # free reshape
    tgt_packed = target.astype(jnp.int32).reshape(rows, g)    # tiny copy

    # ---- tile sizing by bytes (pred row + lane-padded int32 target row) ----
    cp_pad = -(-cp // 128) * 128
    per_row_bytes = cp_pad * itemsize + 128 * 4
    if tile_rows is None:
        stage_budget = 8 << 20                # ~16 MiB once double-buffered
        tile_rows = max(8, (stage_budget // per_row_bytes) // 8 * 8)
    if tile_rows >= rows:
        tile_rows = rows                      # single tile: full-dim block is legal
    else:
        tile_rows = max(8, (tile_rows // 8) * 8)

    num_row_tiles = -(-rows // tile_rows)
    num_slices = 2 if num_row_tiles >= 2 else 1      # keep both v7x TCs busy
    tiles_per_slice = -(-num_row_tiles // num_slices)

    def row_block(s, i):
        # clamp phantom steps (odd tile count split across 2 slices) onto the
        # last real block; the kernel masks their contribution to exactly 0.
        return (jnp.minimum(s * tiles_per_slice + i, num_row_tiles - 1), 0)

    kernel = functools.partial(_nll_loss_kernel, c=c, rows_total=rows,
                               tiles_per_slice=tiles_per_slice)

    vmem_need = 2 * tile_rows * per_row_bytes + (1 << 20)
    partials = pl.pallas_call(
        kernel,
        out_shape=jax.ShapeDtypeStruct((num_slices, 1), jnp.float32),
        grid=(num_slices, tiles_per_slice),
        in_specs=[
            pl.BlockSpec((tile_rows, cp), row_block),   # packed pred (native dtype)
            pl.BlockSpec((tile_rows, g), row_block),    # packed int32 targets
        ],
        out_specs=pl.BlockSpec((1, 1), lambda s, i: (s, 0)),  # per-slice accumulator
        compiler_params=pltpu.CompilerParams(
            dimension_semantics=("parallel", "arbitrary"),
            vmem_limit_bytes=max(32 << 20, vmem_need),
        ),
        cost_estimate=pl.CostEstimate(
            flops=2 * n * c,
            transcendentals=0,
            bytes_accessed=n * c * itemsize + n * 4 + num_slices * 4,
        ),
    )(pred_packed, tgt_packed)

    # tiny epilogue: sum of <=2 partials and the -1/N scale (one fused XLA op).
    # Returned in f32 (PyTorch would return pred.dtype; f32 kept for precision).
    return -(jnp.sum(partials) / jnp.float32(n))


if __name__ == "__main__":
    key = jax.random.PRNGKey(0)
    k1, k2, k3, k4, k5 = jax.random.split(key, 5)

    # Case 1: PointNet++ classification head shape (batch=24, classes=40, f32).
    # g=3 -> packed (8, 120), single tile, steady-state (unmasked) path.
    N1, C1 = 24, 40
    logits1 = jax.random.normal(k1, (N1, C1), dtype=jnp.float32)
    pred1 = jax.nn.log_softmax(logits1, axis=-1)          # NLL expects log-probs
    target1 = jax.random.randint(k2, (N1,), 0, C1, dtype=jnp.int32)
    trans_feat = jax.random.normal(k3, (N1, 4, 4), dtype=jnp.float32)  # unused

    loss1 = jax.block_until_ready(nll_loss_pallas(pred1, target1, trans_feat))
    ref1 = -jnp.mean(pred1[jnp.arange(N1), target1])
    assert jnp.allclose(loss1, ref1, atol=1e-6), (loss1, ref1)

    # Case 2: bf16 pred, forced small row tiles -> multi-tile grid with a ragged
    # last tile, a phantom tile (3 tiles split over 2 parallel slices), and the
    # two-slice accumulator path.
    N2, C2 = 100, 24
    logits2 = jax.random.normal(k4, (N2, C2), dtype=jnp.float32)
    pred2 = jax.nn.log_softmax(logits2, axis=-1).astype(jnp.bfloat16)
    target2 = jax.random.randint(k5, (N2,), 0, C2, dtype=jnp.int32)

    loss2 = jax.block_until_ready(nll_loss_pallas(pred2, target2, None, tile_rows=8))
    ref2 = -jnp.mean(pred2.astype(jnp.float32)[jnp.arange(N2), target2])
    assert jnp.allclose(loss2, ref2, atol=1e-5), (loss2, ref2)

    print("KERNEL_OK")
</pallas_src>

<mosaic_0001>
module attributes {stable_mosaic.version = 11 : i64} {
  func.func @_nll_loss_kernel(%arg0: i32, %arg1: i32, %arg2: memref<8x120xf32, #tpu.memory_space<vmem>>, %arg3: memref<8x3xi32, #tpu.memory_space<vmem>>, %arg4: memref<1x1xf32, #tpu.memory_space<vmem>>) attributes {dimension_semantics = [#tpu.dimension_semantics<parallel>, #tpu.dimension_semantics<arbitrary>], iteration_bounds = array<i64: 1, 1>, scalar_prefetch = 0 : i64, scratch_operands = 0 : i64, tpu.core_type = #tpu.core_type<tc>, window_params = [{transform_indices = @transform_0, window_bounds = array<i64: 8, 120>}, {transform_indices = @transform_1, window_bounds = array<i64: 8, 3>}, {transform_indices = @transform_2, window_bounds = array<i64: 1, 1>}]} {
    %c1_i32 = arith.constant 1 : i32
    %0 = arith.muli %arg0, %c1_i32 : i32
    %1 = arith.addi %0, %arg1 : i32
    %c0_i32 = arith.constant 0 : i32
    %2 = arith.cmpi eq, %arg1, %c0_i32 : i32
    %3 = arith.extui %2 : i1 to i32
    %c0_i32_0 = arith.constant 0 : i32
    %4 = arith.cmpi ne, %3, %c0_i32_0 : i32
    scf.if %4 {
      %cst = arith.constant 0.000000e+00 : f32
      %31 = vector.broadcast %cst : f32 to vector<1x1xf32>
      %c0_8 = arith.constant 0 : index
      %c0_9 = arith.constant 0 : index
      %32 = vector.load %arg4[%c0_8, %c0_9] : memref<1x1xf32, #tpu.memory_space<vmem>>, vector<1x1xf32>
      tpu.vector_store %arg4[%c0_8, %c0_9], %31 {strides = array<i32>} : memref<1x1xf32, #tpu.memory_space<vmem>>, vector<1x1xf32>,
    } else {
    }
    %c0 = arith.constant 0 : index
    %c0_1 = arith.constant 0 : index
    %5 = vector.load %arg2[%c0, %c0_1] : memref<8x120xf32, #tpu.memory_space<vmem>>, vector<8x120xf32>
    %c0_2 = arith.constant 0 : index
    %c0_3 = arith.constant 0 : index
    %6 = vector.load %arg3[%c0_2, %c0_3] : memref<8x3xi32, #tpu.memory_space<vmem>>, vector<8x3xi32>
    %7 = tpu.iota {dimensions = array<i32: 1>} : vector<8x120xi32>
    %8 = vector.extract_strided_slice %6 {offsets = [0, 0], sizes = [8, 1], strides = [1, 1]} : vector<8x3xi32> to vector<8x1xi32>
    %9 = vector.broadcast %8 : vector<8x1xi32> to vector<8x120xi32>
    %10 = arith.cmpi eq, %7, %9 : vector<8x120xi32>
    %11 = vector.extract_strided_slice %6 {offsets = [0, 1], sizes = [8, 1], strides = [1, 1]} : vector<8x3xi32> to vector<8x1xi32>
    %c40_i32 = arith.constant 40 : i32
    %12 = vector.broadcast %c40_i32 : i32 to vector<8x1xi32>
    %13 = arith.addi %11, %12 : vector<8x1xi32>
    %14 = vector.broadcast %13 : vector<8x1xi32> to vector<8x120xi32>
    %15 = arith.cmpi eq, %7, %14 : vector<8x120xi32>
    %16 = arith.ori %10, %15 : vector<8x120xi1>
    %17 = vector.extract_strided_slice %6 {offsets = [0, 2], sizes = [8, 1], strides = [1, 1]} : vector<8x3xi32> to vector<8x1xi32>
    %c80_i32 = arith.constant 80 : i32
    %18 = vector.broadcast %c80_i32 : i32 to vector<8x1xi32>
    %19 = arith.addi %17, %18 : vector<8x1xi32>
    %20 = vector.broadcast %19 : vector<8x1xi32> to vector<8x120xi32>
    %21 = arith.cmpi eq, %7, %20 : vector<8x120xi32>
    %22 = arith.ori %16, %21 : vector<8x120xi1>
    %c8_i32 = arith.constant 8 : i32
    %23 = arith.muli %1, %c8_i32 : i32
    %c8_i32_4 = arith.constant 8 : i32
    %24 = arith.addi %23, %c8_i32_4 : i32
    %c8_i32_5 = arith.constant 8 : i32
    %25 = arith.cmpi sle, %24, %c8_i32_5 : i32
    %26 = arith.extui %25 : i1 to i32
    %c0_i32_6 = arith.constant 0 : i32
    %27 = arith.cmpi ne, %26, %c0_i32_6 : i32
    scf.if %27 {
      %cst = arith.constant 0.000000e+00 : f32
      %31 = vector.broadcast %cst : f32 to vector<8x120xf32>
      %32 = arith.select %22, %5, %31 : vector<8x120xi1>, vector<8x120xf32>
      %c0_8 = arith.constant 0 : index
      %c0_9 = arith.constant 0 : index
      %33 = vector.load %arg4[%c0_8, %c0_9] : memref<1x1xf32, #tpu.memory_space<vmem>>, vector<1x1xf32>
      %34 = vector.shape_cast %32 : vector<8x120xf32> to vector<1x8x120xf32>
      %cst_10 = arith.constant dense<0.000000e+00> : vector<1xf32>
      %35 = vector.multi_reduction <add>, %34, %cst_10 [1, 2] : vector<1x8x120xf32> to vector<1xf32>
      %36 = vector.shape_cast %35 : vector<1xf32> to vector<1x1x1xf32>
      %37 = vector.extract %36[0, 0, 0] : f32 from vector<1x1x1xf32>
      %38 = vector.broadcast %37 : f32 to vector<1x1xf32>
      %39 = arith.addf %33, %38 : vector<1x1xf32>
      %c0_11 = arith.constant 0 : index
      %c0_12 = arith.constant 0 : index
      %40 = vector.load %arg4[%c0_11, %c0_12] : memref<1x1xf32, #tpu.memory_space<vmem>>, vector<1x1xf32>
      tpu.vector_store %arg4[%c0_11, %c0_12], %39 {strides = array<i32>} : memref<1x1xf32, #tpu.memory_space<vmem>>, vector<1x1xf32>,
    } else {
    }
    %true = arith.constant true
    %28 = arith.xori %25, %true : i1
    %29 = arith.extui %28 : i1 to i32
    %c0_i32_7 = arith.constant 0 : i32
    %30 = arith.cmpi ne, %29, %c0_i32_7 : i32
    scf.if %30 {
      %31 = tpu.iota {dimensions = array<i32: 0>} : vector<8x1xi32>
      %32 = vector.broadcast %23 : i32 to vector<8x1xi32>
      %33 = arith.addi %31, %32 : vector<8x1xi32>
      %c8_i32_8 = arith.constant 8 : i32
      %34 = vector.broadcast %c8_i32_8 : i32 to vector<8x1xi32>
      %35 = arith.cmpi slt, %33, %34 : vector<8x1xi32>
      %36 = vector.broadcast %35 : vector<8x1xi1> to vector<8x120xi1>
      %37 = arith.andi %22, %36 : vector<8x120xi1>
      %cst = arith.constant 0.000000e+00 : f32
      %38 = vector.broadcast %cst : f32 to vector<8x120xf32>
      %39 = arith.select %37, %5, %38 : vector<8x120xi1>, vector<8x120xf32>
      %c0_9 = arith.constant 0 : index
      %c0_10 = arith.constant 0 : index
      %40 = vector.load %arg4[%c0_9, %c0_10] : memref<1x1xf32, #tpu.memory_space<vmem>>, vector<1x1xf32>
      %41 = vector.shape_cast %39 : vector<8x120xf32> to vector<1x8x120xf32>
      %cst_11 = arith.constant dense<0.000000e+00> : vector<1xf32>
      %42 = vector.multi_reduction <add>, %41, %cst_11 [1, 2] : vector<1x8x120xf32> to vector<1xf32>
      %43 = vector.shape_cast %42 : vector<1xf32> to vector<1x1x1xf32>
      %44 = vector.extract %43[0, 0, 0] : f32 from vector<1x1x1xf32>
      %45 = vector.broadcast %44 : f32 to vector<1x1xf32>
      %46 = arith.addf %40, %45 : vector<1x1xf32>
      %c0_12 = arith.constant 0 : index
      %c0_13 = arith.constant 0 : index
      %47 = vector.load %arg4[%c0_12, %c0_13] : memref<1x1xf32, #tpu.memory_space<vmem>>, vector<1x1xf32>
      tpu.vector_store %arg4[%c0_12, %c0_13], %46 {strides = array<i32>} : memref<1x1xf32, #tpu.memory_space<vmem>>, vector<1x1xf32>,
    } else {
    }
    return
  }
  func.func @transform_0(%arg0: i32, %arg1: i32) -> (i32, i32) {
    %c1_i32 = arith.constant 1 : i32
    %0 = arith.muli %arg0, %c1_i32 : i32
    %1 = arith.addi %0, %arg1 : i32
    %c0_i32 = arith.constant 0 : i32
    %2 = arith.minsi %1, %c0_i32 : i32
    %c0_i32_0 = arith.constant 0 : i32
    %c0_i32_1 = arith.constant 0 : i32
    return %2, %c0_i32_0 : i32, i32
  }
  func.func @transform_1(%arg0: i32, %arg1: i32) -> (i32, i32) {
    %c1_i32 = arith.constant 1 : i32
    %0 = arith.muli %arg0, %c1_i32 : i32
    %1 = arith.addi %0, %arg1 : i32
    %c0_i32 = arith.constant 0 : i32
    %2 = arith.minsi %1, %c0_i32 : i32
    %c0_i32_0 = arith.constant 0 : i32
    %c0_i32_1 = arith.constant 0 : i32
    return %2, %c0_i32_0 : i32, i32
  }
  func.func @transform_2(%arg0: i32, %arg1: i32) -> (i32, i32) {
    %c0_i32 = arith.constant 0 : i32
    %c0_i32_0 = arith.constant 0 : i32
    return %arg0, %c0_i32 : i32, i32
  }
}

</mosaic_0001>

<bundles_post_ra>
// kernel: tpu_custom_call.1
= control target key start
LH: loop header
LB: loop body
LE: loop exit
PB: predicated region body
PF: predicated region fallthrough
CT: control target
= control target key end

     0   :  { %s241_s0 = inlined_call_operand.vmem [shape: f32[8,120], index: 0, kind: input, shape index: {}]   ;;  %s242_s1 = inlined_call_operand.vmem [shape: s32[8,3], index: 1, kind: input, shape index: {}]   ;;  %s243_s2 = inlined_call_operand.hbm [shape: f32[1,1], index: 2, kind: output, shape index: {}]  }
   0x1   :  { %v74_v0 = vld [vmem:[%s242_s1] sm:$0xff] }
   0x2   :  { %7 = vsyncpa [#allocation3], 0  ;;  %v210_v1 = vmov 0   ;;  %v211_v2 = vmov 2   ;;  %v87_v3 = vadd.s32 80, %v74_v0  ;;  %v81_v4 = vadd.s32 40, %v74_v0 }
   0x3   :  { %180 = vset.pattern.permute.xlu0 %v210_v1  ;;  %182 = vset.pattern.permute.xlu1 %v211_v2  ;;  %v212_v5 = vmov 1   ;;  %v75_v7 = vlaneseq  ;;  %v73_v11 = vld [vmem:[%s241_s0] sm:$0xff]  ;;  %vm101_vm4 = vcmask 982016   ;;  %vm71_vm6 = vcmask 0   ;;  %s214_s0 = smov [#allocation2]   ;;  %s152_s15 = sshll.u32 %s243_s2, 4  ;;  %s153_s15 = int_to_ptr.hbm [resolvable:$true] %s152_s15 }
   0x4   :  { %78 = vperm.xlu0 %180, %v74_v0   ;;  %89 = vperm.xlu1 %182, %v87_v3   ;;  %v213_v14 = vmov 0.0   ;;  %s150_s12 = sshll.u32 %s214_s0, 4  ;;  %s151_s12 = int_to_ptr.vmem [resolvable:$true] %s150_s12 }
   0x5   :  { %v76_v8 = vand.u32 127, %v75_v7  ;;  %72 = vst.msk [vmem:[#allocation2] sm:$0x1] %vm71_vm6, %v213_v14 }
   0xc   :  { %181 = vset.pattern.permute.xlu0 %v212_v5  ;;  %v100_v22 = vld [vmem:[#allocation2] sm:$0x1] }
   0xd   :  { %83 = vperm.xlu0 %181, %v81_v4  }
  0x15   :  { %183 = vset.pattern.permute.xlu0 %v211_v2 }
  0x76   :  { %v79_v6 = vpop.permute.xlu0 %78  ;;  %v90_v9 = vpop.permute.xlu1 %89 }
  0x77   :  { %vm91_vm0 = vcmp.eq.s32.totalorder %v76_v8, %v90_v9  ;;  %vm80_vm1 = vcmp.eq.s32.totalorder %v76_v8, %v79_v6 }
  0x7f   :  { %v84_v10 = vpop.permute.xlu0 %83 }
  0x80   :  { %vm85_vm2 = vcmp.eq.s32.totalorder %v76_v8, %v84_v10 }
  0x81   :  { %vm86_vm3 = vmor %vm80_vm1, %vm85_vm2 }
  0x82   :  { %vm92_vm5 = vmor %vm86_vm3, %vm91_vm0 }
  0x83   :  { %v99_v12 = vsel %vm92_vm5, %v73_v11, 0.0 }
  0x84   :  { %v102_v13 = vsel %vm101_vm4, %v99_v12, 0.0 }
  0x85   :  { %103 = vadd.xlane.f32.xlu1 %v102_v13 }
  0xf8   :  { %v104_v15 = vpop.xlane.xlu1 %103 }
  0xf9   :  { %v105_v16 = vrot.slane %v104_v15, 4 }
  0xfb   :  { %v106_v17 = vadd.f32 %v105_v16, %v104_v15 }
  0xfd   :  { %v107_v18 = vrot.slane %v106_v17, 2 }
  0xff   :  { %v108_v19 = vadd.f32 %v107_v18, %v106_v17 }
 0x101   :  { %v109_v20 = vrot.slane %v108_v19, 1 }
 0x103   :  { %v110_v21 = vadd.f32 %v109_v20, %v108_v19 }
 0x105   :  { %173 = vpush %v110_v21 }
 0x136   :  { %s174_s16 = spop %173 }
 0x137   :  { %v112_v23 = vstv %s174_s16 }
 0x138   :  { %v113_v24 = vadd.f32 %v112_v23, %v100_v22 }
 0x13a   :  { %115 = vst.msk [vmem:[#allocation2] sm:$0x1] %vm71_vm6, %v113_v24 }
 0x13b   :  { %155 = dma.vmem_to_hbm [thread:$0]  %s151_s12, 16, %s153_s15, [#allocation3]  }
 0x13c   :  { %208 = dma.done.wait [#allocation3], 16  }
 0x13d   :  { %209 = vsyncadd [#allocation3], 4294967280 }
 0x13e   :  { %160 = vsyncpa [#allocation3], 1 }

</bundles_post_ra>
